<compile_context>
chip_gen: v6e
topology: v6e:2x2x1
jax: 0.10.0
libtpu: 0.0.40
codegen_flags: <defaults>
</compile_context>

<pallas_src>
import functools

import jax
import jax.numpy as jnp
from jax.experimental import pallas as pl
from jax.experimental.pallas import tpu as pltpu


def _round_up(n, m):
    return ((n + m - 1) // m) * m


def _noise_level_kernel_lane_dense(x_ref, w1_ref, b1_ref, w2_ref, b2_ref,
                                   w3_ref, b3_ref, o_ref):
    """output_dim == 1 path: lane-dense [1, bm] output row."""
    x = x_ref[...]                                                 # [bm, D] f32

    # fc1 + ReLU
    h1 = jnp.dot(x, w1_ref[...], preferred_element_type=jnp.float32)
    h1 = jnp.maximum(h1 + b1_ref[...], 0.0)                        # [bm, H]

    # fc2 + ReLU
    h2 = jnp.dot(h1, w2_ref[...], preferred_element_type=jnp.float32)
    h2 = jnp.maximum(h2 + b2_ref[...], 0.0)                        # [bm, H]

    # fc3: [1,H] contracted with [bm,H] on H -> [1, bm] (A @ B^T), so the
    # per-row scalar lands in the lane dimension -> dense output stores.
    z = jax.lax.dot_general(w3_ref[...], h2,
                            (((1,), (1,)), ((), ())),
                            preferred_element_type=jnp.float32)    # [1, bm]
    z = z + b3_ref[0, 0]                                           # SMEM scalar
    o_ref[...] = jax.nn.sigmoid(z).astype(o_ref.dtype)


def _noise_level_kernel_generic(x_ref, w1_ref, b1_ref, w2_ref, b2_ref,
                                w3_ref, b3_ref, o_ref):
    """Fallback for output_dim > 1: ordinary [bm, O] output block."""
    x = x_ref[...]
    h1 = jnp.maximum(
        jnp.dot(x, w1_ref[...], preferred_element_type=jnp.float32)
        + b1_ref[...], 0.0)
    h2 = jnp.maximum(
        jnp.dot(h1, w2_ref[...], preferred_element_type=jnp.float32)
        + b2_ref[...], 0.0)
    # h2 [bm,H] x w3 [O,H] contracted on H -> [bm, O]
    z = jax.lax.dot_general(h2, w3_ref[...],
                            (((1,), (1,)), ((), ())),
                            preferred_element_type=jnp.float32) + b3_ref[...]
    o_ref[...] = jax.nn.sigmoid(z).astype(o_ref.dtype)


def noise_level_network(x, params, *, bm=2048):
    """Forward pass of NoiseLevelNetwork.

    x: [B, input_dim] float32
    params: dict with
      w1 [D, H], b1 [1, H], w2 [H, H], b2 [1, H],
      w3 [O, H] (PyTorch layout), b3 [1, O]
    """
    B, D = x.shape
    H = params["w1"].shape[1]
    O = params["w3"].shape[0]

    # Big batch tile (amortizes ~0.35us/grid-step overhead) but keep >= 2 grid
    # steps when possible so "parallel" can use both v7x TensorCores.
    bm_eff = max(8, min(bm, _round_up(pl.cdiv(B, 2), 8)))
    grid = (pl.cdiv(B, bm_eff),)   # partial last x block; no host-side padding

    full = lambda i: (0, 0)
    batched = lambda i: (i, 0)

    common_in_specs = [
        pl.BlockSpec((bm_eff, D), batched),   # x tile over batch
        pl.BlockSpec((D, H), full),           # w1
        pl.BlockSpec((1, H), full),           # b1
        pl.BlockSpec((H, H), full),           # w2
        pl.BlockSpec((1, H), full),           # b2
        pl.BlockSpec((O, H), full),           # w3 ([O, H])
    ]

    cost = pl.CostEstimate(
        flops=2 * B * (D * H + H * H + H * O),
        transcendentals=B * O,
        bytes_accessed=4 * (B * D + B * O + D * H + H * H + H * O + 2 * H + O),
    )
    cparams = pltpu.CompilerParams(
        dimension_semantics=("parallel",),     # shard grid across TCs on v7x
        vmem_limit_bytes=32 * 1024 * 1024,     # explicit; footprint is <1 MiB
    )

    if O == 1:
        G = grid[0]
        out = pl.pallas_call(
            _noise_level_kernel_lane_dense,
            out_shape=jax.ShapeDtypeStruct((G, 1, bm_eff), x.dtype),
            grid_spec=pltpu.PrefetchScalarGridSpec(
                num_scalar_prefetch=0,
                grid=grid,
                in_specs=common_in_specs + [
                    # b3 is a single scalar -> read from SMEM, splat in-kernel.
                    pl.BlockSpec(memory_space=pltpu.MemorySpace.SMEM),
                ],
                out_specs=pl.BlockSpec((None, 1, bm_eff),
                                       lambda i: (i, 0, 0)),
            ),
            compiler_params=cparams,
            cost_estimate=cost,
        )(x, params["w1"], params["b1"], params["w2"], params["b2"],
          params["w3"], params["b3"])
        # (G, 1, bm_eff) -> (B, 1); tail rows of the last tile are garbage from
        # the partial input block and are sliced off here.
        return out.reshape(-1)[:B].reshape(B, 1)

    # Generic output_dim > 1 path (not the module default).
    out = pl.pallas_call(
        _noise_level_kernel_generic,
        out_shape=jax.ShapeDtypeStruct((B, O), x.dtype),
        grid_spec=pltpu.PrefetchScalarGridSpec(
            num_scalar_prefetch=0,
            grid=grid,
            in_specs=common_in_specs + [pl.BlockSpec((1, O), full)],
            out_specs=pl.BlockSpec((bm_eff, O), batched),
        ),
        compiler_params=cparams,
        cost_estimate=cost,
    )(x, params["w1"], params["b1"], params["w2"], params["b2"],
      params["w3"], params["b3"])
    return out


def init_params(key, input_dim, hidden_dim=32, output_dim=1):
    """Deterministic parameter init (uniform, roughly like PyTorch's default)."""
    ks = jax.random.split(key, 6)

    def uniform(k, shape, fan_in):
        bound = 1.0 / jnp.sqrt(fan_in)
        return jax.random.uniform(k, shape, jnp.float32, -bound, bound)

    return {
        "w1": uniform(ks[0], (input_dim, hidden_dim), input_dim),
        "b1": uniform(ks[1], (1, hidden_dim), input_dim),
        "w2": uniform(ks[2], (hidden_dim, hidden_dim), hidden_dim),
        "b2": uniform(ks[3], (1, hidden_dim), hidden_dim),
        "w3": uniform(ks[4], (output_dim, hidden_dim), hidden_dim),  # [O, H]
        "b3": uniform(ks[5], (1, output_dim), hidden_dim),
    }


def _reference(x, p):
    h1 = jnp.maximum(x @ p["w1"] + p["b1"], 0.0)
    h2 = jnp.maximum(h1 @ p["w2"] + p["b2"], 0.0)
    return jax.nn.sigmoid(h2 @ p["w3"].T + p["b3"])


if __name__ == "__main__":
    key = jax.random.PRNGKey(0)
    k_x, k_p = jax.random.split(key)

    input_dim, hidden_dim, output_dim = 16, 32, 1
    params = init_params(k_p, input_dim, hidden_dim, output_dim)

    # Main check: batch = 512 -> two 256-row tiles (>=2 steps keeps both v7x
    # TensorCores busy while exercising the multi-step grid path).
    batch = 512
    x = jax.random.normal(k_x, (batch, input_dim), jnp.float32)
    out = jax.block_until_ready(noise_level_network(x, params))
    ref = _reference(x, params)
    assert out.shape == (batch, output_dim)
    # Full f32 matmuls now -> tight tolerance vs the f32 reference.
    assert jnp.allclose(out, ref, atol=1e-4, rtol=1e-4), float(
        jnp.max(jnp.abs(out - ref)))

    # Ragged-batch check: exercises the partial last block (no host-side pad).
    x_small = x[:20]
    out_small = jax.block_until_ready(noise_level_network(x_small, params))
    ref_small = _reference(x_small, params)
    assert out_small.shape == (20, output_dim)
    assert jnp.allclose(out_small, ref_small, atol=1e-4, rtol=1e-4), float(
        jnp.max(jnp.abs(out_small - ref_small)))

    print("KERNEL_OK")
</pallas_src>

<mosaic_0001>
module attributes {stable_mosaic.version = 11 : i64} {
  func.func @_noise_level_kernel_lane_dense(%arg0: i32, %arg1: memref<256x16xf32, #tpu.memory_space<vmem>>, %arg2: memref<16x32xf32, #tpu.memory_space<vmem>>, %arg3: memref<1x32xf32, #tpu.memory_space<vmem>>, %arg4: memref<32x32xf32, #tpu.memory_space<vmem>>, %arg5: memref<1x32xf32, #tpu.memory_space<vmem>>, %arg6: memref<1x32xf32, #tpu.memory_space<vmem>>, %arg7: memref<1x1xf32, #tpu.memory_space<smem>>, %arg8: memref<1x1x256xf32, #tpu.memory_space<vmem>>) attributes {dimension_semantics = [#tpu.dimension_semantics<parallel>], iteration_bounds = array<i64: 2>, scalar_prefetch = 0 : i64, scratch_operands = 0 : i64, tpu.core_type = #tpu.core_type<tc>, window_params = [{transform_indices = @transform_0, window_bounds = array<i64: 256, 16>}, {pipeline_mode = #tpu.pipeline_mode<synchronous>, transform_indices = @transform_1, window_bounds = array<i64: 16, 32>}, {pipeline_mode = #tpu.pipeline_mode<synchronous>, transform_indices = @transform_2, window_bounds = array<i64: 1, 32>}, {pipeline_mode = #tpu.pipeline_mode<synchronous>, transform_indices = @transform_3, window_bounds = array<i64: 32, 32>}, {pipeline_mode = #tpu.pipeline_mode<synchronous>, transform_indices = @transform_4, window_bounds = array<i64: 1, 32>}, {pipeline_mode = #tpu.pipeline_mode<synchronous>, transform_indices = @transform_5, window_bounds = array<i64: 1, 32>}, {transform_indices = @transform_6, window_bounds = array<i64: 1, 1>}, {transform_indices = @transform_7, window_bounds = array<i64: 1, 1, 256>}]} {
    %c0 = arith.constant 0 : index
    %c0_0 = arith.constant 0 : index
    %0 = vector.load %arg1[%c0, %c0_0] : memref<256x16xf32, #tpu.memory_space<vmem>>, vector<256x16xf32>
    %c0_1 = arith.constant 0 : index
    %c0_2 = arith.constant 0 : index
    %1 = vector.load %arg2[%c0_1, %c0_2] : memref<16x32xf32, #tpu.memory_space<vmem>>, vector<16x32xf32>
    %cst = arith.constant dense<0.000000e+00> : vector<256x32xf32>
    %2 = tpu.matmul %0, %1, %cst {dimension_numbers = #tpu.dot_dimension_numbers<[1], [0], [0], [1], [0, 0, 1, 1], [], []>} : vector<256x16xf32>, vector<16x32xf32>, vector<256x32xf32> -> vector<256x32xf32>
    %c0_3 = arith.constant 0 : index
    %c0_4 = arith.constant 0 : index
    %3 = vector.load %arg3[%c0_3, %c0_4] : memref<1x32xf32, #tpu.memory_space<vmem>>, vector<1x32xf32>
    %4 = vector.broadcast %3 : vector<1x32xf32> to vector<256x32xf32>
    %5 = arith.addf %2, %4 : vector<256x32xf32>
    %cst_5 = arith.constant 0.000000e+00 : f32
    %6 = vector.broadcast %cst_5 : f32 to vector<256x32xf32>
    %7 = arith.maximumf %5, %6 : vector<256x32xf32>
    %c0_6 = arith.constant 0 : index
    %c0_7 = arith.constant 0 : index
    %8 = vector.load %arg4[%c0_6, %c0_7] : memref<32x32xf32, #tpu.memory_space<vmem>>, vector<32x32xf32>
    %cst_8 = arith.constant dense<0.000000e+00> : vector<256x32xf32>
    %9 = tpu.matmul %7, %8, %cst_8 {dimension_numbers = #tpu.dot_dimension_numbers<[1], [0], [0], [1], [0, 0, 1, 1], [], []>} : vector<256x32xf32>, vector<32x32xf32>, vector<256x32xf32> -> vector<256x32xf32>
    %c0_9 = arith.constant 0 : index
    %c0_10 = arith.constant 0 : index
    %10 = vector.load %arg5[%c0_9, %c0_10] : memref<1x32xf32, #tpu.memory_space<vmem>>, vector<1x32xf32>
    %11 = vector.broadcast %10 : vector<1x32xf32> to vector<256x32xf32>
    %12 = arith.addf %9, %11 : vector<256x32xf32>
    %cst_11 = arith.constant 0.000000e+00 : f32
    %13 = vector.broadcast %cst_11 : f32 to vector<256x32xf32>
    %14 = arith.maximumf %12, %13 : vector<256x32xf32>
    %c0_12 = arith.constant 0 : index
    %c0_13 = arith.constant 0 : index
    %15 = vector.load %arg6[%c0_12, %c0_13] : memref<1x32xf32, #tpu.memory_space<vmem>>, vector<1x32xf32>
    %cst_14 = arith.constant dense<0.000000e+00> : vector<1x256xf32>
    %16 = tpu.matmul %15, %14, %cst_14 {dimension_numbers = #tpu.dot_dimension_numbers<[1], [1], [0], [0], [0, 0, 1, 0], [], []>} : vector<1x32xf32>, vector<256x32xf32>, vector<1x256xf32> -> vector<1x256xf32>
    %c0_15 = arith.constant 0 : index
    %c0_16 = arith.constant 0 : index
    %17 = memref.load %arg7[%c0_15, %c0_16] : memref<1x1xf32, #tpu.memory_space<smem>>
    %18 = vector.broadcast %17 : f32 to vector<1x256xf32>
    %19 = arith.addf %16, %18 : vector<1x256xf32>
    %20 = arith.negf %19 : vector<1x256xf32>
    %21 = math.exp %20 : vector<1x256xf32>
    %cst_17 = arith.constant 1.000000e+00 : f32
    %22 = vector.broadcast %cst_17 : f32 to vector<1x256xf32>
    %23 = arith.addf %22, %21 : vector<1x256xf32>
    %24 = arith.divf %22, %23 : vector<1x256xf32>
    %c0_18 = arith.constant 0 : index
    %c0_19 = arith.constant 0 : index
    %c0_20 = arith.constant 0 : index
    %25 = vector.load %arg8[%c0_18, %c0_19, %c0_20] : memref<1x1x256xf32, #tpu.memory_space<vmem>>, vector<1x1x256xf32>
    %26 = vector.shape_cast %25 : vector<1x1x256xf32> to vector<1x256xf32>
    %27 = vector.shape_cast %24 : vector<1x256xf32> to vector<1x1x256xf32>
    tpu.vector_store %arg8[%c0_18, %c0_19, %c0_20], %27 {strides = array<i32>} : memref<1x1x256xf32, #tpu.memory_space<vmem>>, vector<1x1x256xf32>,
    return
  }
  func.func @transform_0(%arg0: i32) -> (i32, i32) {
    %c0_i32 = arith.constant 0 : i32
    %c0_i32_0 = arith.constant 0 : i32
    return %arg0, %c0_i32 : i32, i32
  }
  func.func @transform_1(%arg0: i32) -> (i32, i32) {
    %c0_i32 = arith.constant 0 : i32
    %c0_i32_0 = arith.constant 0 : i32
    %c0_i32_1 = arith.constant 0 : i32
    return %c0_i32, %c0_i32_0 : i32, i32
  }
  func.func @transform_2(%arg0: i32) -> (i32, i32) {
    %c0_i32 = arith.constant 0 : i32
    %c0_i32_0 = arith.constant 0 : i32
    %c0_i32_1 = arith.constant 0 : i32
    return %c0_i32, %c0_i32_0 : i32, i32
  }
  func.func @transform_3(%arg0: i32) -> (i32, i32) {
    %c0_i32 = arith.constant 0 : i32
    %c0_i32_0 = arith.constant 0 : i32
    %c0_i32_1 = arith.constant 0 : i32
    return %c0_i32, %c0_i32_0 : i32, i32
  }
  func.func @transform_4(%arg0: i32) -> (i32, i32) {
    %c0_i32 = arith.constant 0 : i32
    %c0_i32_0 = arith.constant 0 : i32
    %c0_i32_1 = arith.constant 0 : i32
    return %c0_i32, %c0_i32_0 : i32, i32
  }
  func.func @transform_5(%arg0: i32) -> (i32, i32) {
    %c0_i32 = arith.constant 0 : i32
    %c0_i32_0 = arith.constant 0 : i32
    %c0_i32_1 = arith.constant 0 : i32
    return %c0_i32, %c0_i32_0 : i32, i32
  }
  func.func @transform_6(%arg0: i32) -> (i32, i32) {
    %c0_i32 = arith.constant 0 : i32
    %c0_i32_0 = arith.constant 0 : i32
    %c0_i32_1 = arith.constant 0 : i32
    return %c0_i32, %c0_i32_0 : i32, i32
  }
  func.func @transform_7(%arg0: i32) -> (i32, i32, i32) {
    %c0_i32 = arith.constant 0 : i32
    %c0_i32_0 = arith.constant 0 : i32
    %c0_i32_1 = arith.constant 0 : i32
    return %arg0, %c0_i32, %c0_i32_0 : i32, i32, i32
  }
}

</mosaic_0001>

<bundles_post_ra>
// kernel: tpu_custom_call.1
= control target key start
LH: loop header
LB: loop body
LE: loop exit
PB: predicated region body
PF: predicated region fallthrough
CT: control target
= control target key end

     0   :  { %s2165_s0 = inlined_call_operand.vmem [shape: f32[512,16], index: 0, kind: input, shape index: {}]   ;;  %s2166_s1 = inlined_call_operand.vmem [shape: f32[16,32], index: 1, kind: input, shape index: {}]   ;;  %s2167_s2 = inlined_call_operand.vmem [shape: f32[1,32], index: 2, kind: input, shape index: {}]   ;;  %s2168_s3 = inlined_call_operand.vmem [shape: f32[32,32], index: 3, kind: input, shape index: {}]   ;;  %s2169_s4 = inlined_call_operand.vmem [shape: f32[1,32], index: 4, kind: input, shape index: {}]   ;;  %s2170_s5 = inlined_call_operand.vmem [shape: f32[1,32], index: 5, kind: input, shape index: {}]   ;;  %s2171_s6 = inlined_call_operand.<no memory space> [shape: f32[1,1], index: 6, kind: input, shape index: {}]   ;;  %s2172_s7 = inlined_call_operand.hbm [shape: f32[2,1,256], index: 7, kind: output, shape index: {}]  }
   0x1   :  { %12 = sst [smem:[#allocation2]] %s2171_s6 }
   0x2   :  { %13 = vsyncpa [#allocation4], 0 }
   0x3   :  { %15 = vsyncpa [#allocation4 + $0x1], 0  ;;  %s1803_s26 = smov 0   ;;  %s1805_s27 = smov 0  }
   0x4   :  { %s1807_s28 = smov 0   ;;  %s1809_s29 = smov 0  }
   0x5 LB: > { %s1321_s6 = sadd.s32 4294967295, %s1756_s29   ;;  %s1322_s30 = sadd.s32 4294967294, %s1756_s29   ;;  %s1756_s29 = sphi %s1809_s29, %s2178_s29   ;;  %s1752_s28 = sphi %s1807_s28, %s2177_s28   ;;  %s1748_s27 = sphi %s1805_s27, %s2176_s27   ;;  %s1744_s26 = sphi %s1803_s26, %s2175_s26  }
   0x6   : > { %s1826_s8 = sadd.s32 1, %s1756_s29   ;;  %s180_s9 = sadd.s32 1, %s1752_s28 }
   0x7   : > { %s177_s10 = ssub.s32 %s1756_s29, %s1826_s8  ;;  %p190_p0 = scmp.ne.s32.totalorder %s1752_s28, %s1748_s27 }
   0x8   : > { %p178_p1 = scmp.eq.s32.totalorder %s177_s10, 0  ;;  %p191_p2 = scmp.eq.s32.totalorder %s1321_s6, 1 }
   0x9   : > { %p196_p3 = scmp.ne.s32.totalorder %s1748_s27, %s1744_s26  ;;  %p197_p4 = scmp.eq.s32.totalorder %s1322_s30, 1 }
   0xa   : > { %s1836_s11 = scalar_select %p178_p1, %s1752_s28, %s180_s9  }
   0xb   : > { %p1838_p5 = por %p191_p2, %p190_p0  ;;  %p1842_p6 = por %p197_p4, %p196_p3 }
   0xc   : > { %p1325_p7 = scmp.ge.s32.totalorder %s1756_s29, 1  ;;  %p242_p8 = scmp.lt.s32.totalorder %s1756_s29, 3 }
   0xe   : > { %p243_p9 = pnand %p1325_p7, %p242_p8 }
   0xf   : > { %s1854_s18 = sshll.u32 (!%p243_p9), %s1321_s6, 5  ;;  %s271_s24 = sand.u32 (!%p243_p9), 1, %s1748_s27  }
  0x10   : > { %246 = sbr.rel (%p243_p9) target bundleno = 796 (0x31c), region = 48  ;;  %p275_p10 = scmp.lt.s32.totalorder (!%p243_p9), %s1854_s18, 63 }
  0x11   : > { %s1326_s25 = sshll.u32 (!%p243_p9), %s271_s24, 1  ;;  %s1261_s14 = scalar_lea.hbm (!%p243_p9), %s2172_s7, %s1854_s18 }
  0x12   : > { %s273_s6 = scalar_lea.vmem (!%p243_p9), [#allocation3], %s1326_s25  ;;  %s1249_s15 = scalar_lea.sflag (!%p243_p9), [#allocation4], %s271_s24 }
  0x13   : > { %s1263_s30 = sshll.u32 (!%p243_p9), %s273_s6, 4  ;;  %s1759_s17 = smov (!%p243_p9), [#allocation3]   ;;  %s1264_s30 = int_to_ptr.vmem [resolvable:$true] %s1263_s30 }
  0x14   : > { %s1696_s16 = scalar_lea.vmem (!%p243_p9), %s1264_s30, 32 }
  0x15   : > { %v313_v0 = vld [vmem:[%s2166_s1 + $0x8] sm:$0xff]  ;;  %v312_v1 = vld [vmem:[%s2166_s1] sm:$0xff]  ;;  %s276_s19 = scalar_select %p275_p10, %s1854_s18, 63  ;;  %vm321_vm0 = vcmask 130048   ;;  %v678_v34 = vld [vmem:[%s2168_s3 + $0x18] sm:$0xff]  ;;  %vm686_vm1 = vcmask 261120  }
  0x16   : > { %1540 = vmatprep.subr.mxu0 %v313_v0  ;;  %1592 = vmatprep.subr.mxu1 %v678_v34  ;;  %v677_v35 = vld [vmem:[%s2168_s3 + $0x10] sm:$0xff]  ;;  %v676_v36 = vld [vmem:[%s2168_s3 + $0x8] sm:$0xff]  ;;  %v675_v37 = vld [vmem:[%s2168_s3] sm:$0xff]  ;;  %p1697_p11 = scmp.ne.s32.totalorder %s1264_s30, %s1696_s16 }
  0x17   : > { %1541 = vmatpush3.msra.mxu0 %v313_v0  ;;  %s1328_s20 = sshll.u32 %s276_s19, 3  ;;  %1593 = vmatpush3.msra.mxu1 %v678_v34  ;;  %v1942_v38 = vld [vmem:[%s2167_s2] ss:$0 sm:$0xff]  ;;  %s1700_s19 = sshll.u32 %s1759_s17, 4  ;;  %s1701_s19 = int_to_ptr.vmem [resolvable:$false] %s1700_s19 }
  0x18   : > { %1542 = vmatprep.subr.mxu0 %v312_v1  ;;  %s1861_s23 = scalar_lea.vmem %s2165_s0, %s1328_s20  ;;  %1594 = vmatprep.subr.mxu1 %v677_v35  ;;  %p1698_p12 = pnand %p1697_p11, %p1838_p5 }
  0x19   : > { %1543 = vmatpush3.msra.mxu0 %v312_v1  ;;  %v280_v2 = vld [vmem:[%s1861_s23] sm:$0xff]  ;;  %v281_v3 = vld [vmem:[%s1861_s23 + $0x8] sm:$0xff]  ;;  %v282_v4 = vld [vmem:[%s1861_s23 + $0x10] sm:$0xff]  ;;  %1595 = vmatpush3.msra.mxu1 %v677_v35  ;;  %s1702_s20 = scalar_lea.vmem %s1701_s19, 64  ;;  %p1703_p0 = scmp.lt.s32.totalorder %s1264_s30, %s1701_s19 }
  0x1a   : > { %1544 = vmatprep.mubr.msk.f32.mxu0 %vm321_vm0, %v280_v2  ;;  %v283_v5 = vld [vmem:[%s1861_s23 + $0x18] sm:$0xff]  ;;  %v284_v6 = vld [vmem:[%s1861_s23 + $0x20] sm:$0xff]  ;;  %v285_v7 = vld [vmem:[%s1861_s23 + $0x28] sm:$0xff]  ;;  %1596 = vmatprep.subr.mxu1 %v676_v36  ;;  %p1699_p13 = pneg %p1698_p12  ;;  %p1704_p1 = scmp.lt.s32.totalorder %s1702_s20, %s1696_s16 }
  0x1b   : > { %1545 = vmatmul.mubr.msk.f32.vlgmr.msra.gmra.mxu0 %vm321_vm0, %v281_v3  ;;  %v286_v8 = vld [vmem:[%s1861_s23 + $0x30] sm:$0xff]  ;;  %v287_v9 = vld [vmem:[%s1861_s23 + $0x38] sm:$0xff]  ;;  %v288_v10 = vld [vmem:[%s1861_s23 + $0x40] sm:$0xff]  ;;  %1597 = vmatpush3.msra.mxu1 %v676_v36 }
  0x1c   : > { %1547 = vmatprep.mubr.msk.f32.mxu0 %vm321_vm0, %v282_v4  ;;  %v289_v11 = vld [vmem:[%s1861_s23 + $0x48] sm:$0xff]  ;;  %v290_v12 = vld [vmem:[%s1861_s23 + $0x50] sm:$0xff]  ;;  %v291_v13 = vld [vmem:[%s1861_s23 + $0x58] sm:$0xff]  ;;  %1598 = vmatprep.subr.mxu1 %v675_v37  ;;  %p1705_p2 = por %p1704_p1, %p1703_p0 }
  0x1d   : > { %v292_v14 = vld [vmem:[%s1861_s23 + $0x60] sm:$0xff]  ;;  %v293_v15 = vld [vmem:[%s1861_s23 + $0x68] sm:$0xff]  ;;  %v294_v16 = vld [vmem:[%s1861_s23 + $0x70] sm:$0xff]  ;;  %1599 = vmatpush3.msra.mxu1 %v675_v37 }
  0x1e   : > { %v295_v17 = vld [vmem:[%s1861_s23 + $0x78] sm:$0xff]  ;;  %v296_v18 = vld [vmem:[%s1861_s23 + $0x80] sm:$0xff]  ;;  %v297_v19 = vld [vmem:[%s1861_s23 + $0x88] sm:$0xff]  ;;  %p1706_p3 = pnand %p1705_p2, %p1699_p13 }
  0x1f   : > { %1548 = vmatmul.mubr.msk.f32.gmra.mxu0 %vm321_vm0, %v283_v5  ;;  %v298_v20 = vld [vmem:[%s1861_s23 + $0x90] sm:$0xff]  ;;  %v299_v21 = vld [vmem:[%s1861_s23 + $0x98] sm:$0xff]  ;;  %v300_v22 = vld [vmem:[%s1861_s23 + $0xa0] sm:$0xff] }
  0x20   : > { %1550 = vmatprep.mubr.msk.f32.mxu0 %vm321_vm0, %v284_v6  ;;  %v301_v23 = vld [vmem:[%s1861_s23 + $0xa8] sm:$0xff]  ;;  %v302_v24 = vld [vmem:[%s1861_s23 + $0xb0] sm:$0xff]  ;;  %v303_v25 = vld [vmem:[%s1861_s23 + $0xb8] sm:$0xff] }
  0x21   : > { %v304_v26 = vld [vmem:[%s1861_s23 + $0xc0] sm:$0xff]  ;;  %v305_v27 = vld [vmem:[%s1861_s23 + $0xc8] sm:$0xff]  ;;  %v306_v28 = vld [vmem:[%s1861_s23 + $0xd0] sm:$0xff] }
  0x22   : > { %v307_v29 = vld [vmem:[%s1861_s23 + $0xd8] sm:$0xff]  ;;  %v308_v30 = vld [vmem:[%s1861_s23 + $0xe0] sm:$0xff]  ;;  %v309_v31 = vld [vmem:[%s1861_s23 + $0xe8] sm:$0xff] }
  0x23   : > { %1551 = vmatmul.mubr.msk.f32.gmra.mxu0 %vm321_vm0, %v285_v7  ;;  %v310_v32 = vld [vmem:[%s1861_s23 + $0xf0] sm:$0xff]  ;;  %v311_v33 = vld [vmem:[%s1861_s23 + $0xf8] sm:$0xff]  ;;  %s1041_s23 = sld [smem:[#allocation2]] }
  0x24   : > { %1553 = vmatprep.mubr.msk.f32.mxu0 %vm321_vm0, %v286_v8 }
  0x27   : > { %1554 = vmatmul.mubr.msk.f32.gmra.mxu0 %vm321_vm0, %v287_v9 }
  0x28   : > { %1556 = vmatprep.mubr.msk.f32.mxu0 %vm321_vm0, %v288_v10 }
  0x2b   : > { %1557 = vmatmul.mubr.msk.f32.gmra.mxu0 %vm321_vm0, %v289_v11 }
  0x2c   : > { %1559 = vmatprep.mubr.msk.f32.mxu0 %vm321_vm0, %v290_v12 }
  0x2f   : > { %1560 = vmatmul.mubr.msk.f32.gmra.mxu0 %vm321_vm0, %v291_v13 }
  0x30   : > { %1562 = vmatprep.mubr.msk.f32.mxu0 %vm321_vm0, %v292_v14 }
  0x33   : > { %1563 = vmatmul.mubr.msk.f32.gmra.mxu0 %vm321_vm0, %v293_v15 }
  0x34   : > { %1565 = vmatprep.mubr.msk.f32.mxu0 %vm321_vm0, %v294_v16 }
  0x37   : > { %1566 = vmatmul.mubr.msk.f32.gmra.mxu0 %vm321_vm0, %v295_v17 }
  0x38   : > { %1568 = vmatprep.mubr.msk.f32.mxu0 %vm321_vm0, %v296_v18 }
  0x3b   : > { %1569 = vmatmul.mubr.msk.f32.gmra.mxu0 %vm321_vm0, %v297_v19 }
  0x3c   : > { %1571 = vmatprep.mubr.msk.f32.mxu0 %vm321_vm0, %v298_v20 }
  0x3f   : > { %1572 = vmatmul.mubr.msk.f32.gmra.mxu0 %vm321_vm0, %v299_v21 }
  0x40   : > { %1574 = vmatprep.mubr.msk.f32.mxu0 %vm321_vm0, %v300_v22 }
  0x43   : > { %1575 = vmatmul.mubr.msk.f32.gmra.mxu0 %vm321_vm0, %v301_v23 }
  0x44   : > { %1577 = vmatprep.mubr.msk.f32.mxu0 %vm321_vm0, %v302_v24 }
  0x47   : > { %1578 = vmatmul.mubr.msk.f32.gmra.mxu0 %vm321_vm0, %v303_v25 }
  0x48   : > { %1580 = vmatprep.mubr.msk.f32.mxu0 %vm321_vm0, %v304_v26 }
  0x4b   : > { %1581 = vmatmul.mubr.msk.f32.gmra.mxu0 %vm321_vm0, %v305_v27 }
  0x4c   : > { %1583 = vmatprep.mubr.msk.f32.mxu0 %vm321_vm0, %v306_v28 }
  0x4f   : > { %1584 = vmatmul.mubr.msk.f32.gmra.mxu0 %vm321_vm0, %v307_v29 }
  0x50   : > { %1586 = vmatprep.mubr.msk.f32.mxu0 %vm321_vm0, %v308_v30 }
  0x53   : > { %1587 = vmatmul.mubr.msk.f32.gmra.mxu0 %vm321_vm0, %v309_v31 }
  0x54   : > { %1589 = vmatprep.mubr.msk.f32.mxu0 %vm321_vm0, %v310_v32 }
  0x57   : > { %1590 = vmatmul.mubr.msk.f32.gmra.mxu0 %vm321_vm0, %v311_v33 }
  0xdb   : > { %v1546_v39 = vpop.f32.mrf.mxu0 }
  0xdc   : > { %v490_v40 = vadd.f32 %v1546_v39, %v1942_v38 }
  0xdd   : > { %v484_v41 = vpop.f32.mrf.mxu0 }
  0xde   : > { %v485_v42 = vadd.f32 %v1942_v38, %v484_v41  ;;  %v644_v45 = vmax.f32 %v490_v40, 0.0 }
  0xdf   : > { %v1549_v43 = vpop.f32.mrf.mxu0 }
  0xe0   : > { %v643_v44 = vmax.f32 %v485_v42, 0.0  ;;  %v500_v46 = vadd.f32 %v1549_v43, %v1942_v38 }
  0xe1   : > { %v494_v47 = vpop.f32.mrf.mxu0 }
  0xe2   : > { %v495_v48 = vadd.f32 %v1942_v38, %v494_v47  ;;  %1600 = vmatprep.mubr.msk.f32.mxu1 %vm686_vm1, %v643_v44  ;;  %v646_v51 = vmax.f32 %v500_v46, 0.0 }
  0xe3   : > { %v1552_v49 = vpop.f32.mrf.mxu0  ;;  %1601 = vmatmul.mubr.msk.f32.vlgmr.msra.gmra.mxu1 %vm686_vm1, %v644_v45 }
  0xe4   : > { %v645_v50 = vmax.f32 %v495_v48, 0.0  ;;  %v510_v52 = vadd.f32 %v1552_v49, %v1942_v38 }
  0xe5   : > { %v504_v53 = vpop.f32.mrf.mxu0 }
  0xe6   : > { %v505_v54 = vadd.f32 %v1942_v38, %v504_v53  ;;  %1603 = vmatprep.mubr.msk.f32.mxu1 %vm686_vm1, %v645_v50  ;;  %v648_v57 = vmax.f32 %v510_v52, 0.0 }
  0xe7   : > { %v1555_v55 = vpop.f32.mrf.mxu0  ;;  %1604 = vmatmul.mubr.msk.f32.gmra.mxu1 %vm686_vm1, %v646_v51 }
  0xe8   : > { %v647_v56 = vmax.f32 %v505_v54, 0.0  ;;  %v520_v58 = vadd.f32 %v1555_v55, %v1942_v38 }
  0xe9   : > { %v514_v59 = vpop.f32.mrf.mxu0 }
  0xea   : > { %v515_v60 = vadd.f32 %v1942_v38, %v514_v59  ;;  %1606 = vmatprep.mubr.msk.f32.mxu1 %vm686_vm1, %v647_v56  ;;  %v650_v63 = vmax.f32 %v520_v58, 0.0 }
  0xeb   : > { %v1558_v61 = vpop.f32.mrf.mxu0  ;;  %1607 = vmatmul.mubr.msk.f32.gmra.mxu1 %vm686_vm1, %v648_v57 }
  0xec   : > { %v649_v62 = vmax.f32 %v515_v60, 0.0  ;;  %v530_v0 = vadd.f32 %v1558_v61, %v1942_v38 }
  0xed   : > { %v524_v1 = vpop.f32.mrf.mxu0 }
  0xee   : > { %v525_v2 = vadd.f32 %v1942_v38, %v524_v1  ;;  %1609 = vmatprep.mubr.msk.f32.mxu1 %vm686_vm1, %v649_v62  ;;  %v652_v5 = vmax.f32 %v530_v0, 0.0 }
  0xef   : > { %v1561_v3 = vpop.f32.mrf.mxu0  ;;  %1610 = vmatmul.mubr.msk.f32.gmra.mxu1 %vm686_vm1, %v650_v63 }
  0xf0   : > { %v651_v4 = vmax.f32 %v525_v2, 0.0  ;;  %v540_v6 = vadd.f32 %v1561_v3, %v1942_v38 }
  0xf1   : > { %v534_v7 = vpop.f32.mrf.mxu0 }
  0xf2   : > { %v535_v8 = vadd.f32 %v1942_v38, %v534_v7  ;;  %1612 = vmatprep.mubr.msk.f32.mxu1 %vm686_vm1, %v651_v4  ;;  %v654_v11 = vmax.f32 %v540_v6, 0.0 }
  0xf3   : > { %v1564_v9 = vpop.f32.mrf.mxu0  ;;  %1613 = vmatmul.mubr.msk.f32.gmra.mxu1 %vm686_vm1, %v652_v5 }
  0xf4   : > { %v653_v10 = vmax.f32 %v535_v8, 0.0  ;;  %v550_v12 = vadd.f32 %v1564_v9, %v1942_v38  ;;  %v2011_v8 = vld [vmem:[%s2170_s5] sm:$0x1] }
  0xf5   : > { %v544_v13 = vpop.f32.mrf.mxu0  ;;  %1538 = vmatprep.mubr.msk.f32.mxu0 %vm686_vm1, %v2011_v8 }
  0xf6   : > { %v545_v14 = vadd.f32 %v1942_v38, %v544_v13  ;;  %1615 = vmatprep.mubr.msk.f32.mxu1 %vm686_vm1, %v653_v10  ;;  %v656_v17 = vmax.f32 %v550_v12, 0.0 }
  0xf7   : > { %v1567_v15 = vpop.f32.mrf.mxu0  ;;  %1616 = vmatmul.mubr.msk.f32.gmra.mxu1 %vm686_vm1, %v654_v11 }
  0xf8   : > { %v655_v16 = vmax.f32 %v545_v14, 0.0  ;;  %v560_v18 = vadd.f32 %v1567_v15, %v1942_v38 }
  0xf9   : > { %v554_v19 = vpop.f32.mrf.mxu0 }
  0xfa   : > { %v555_v20 = vadd.f32 %v1942_v38, %v554_v19  ;;  %1618 = vmatprep.mubr.msk.f32.mxu1 %vm686_vm1, %v655_v16  ;;  %v658_v23 = vmax.f32 %v560_v18, 0.0 }
  0xfb   : > { %v1570_v21 = vpop.f32.mrf.mxu0  ;;  %1619 = vmatmul.mubr.msk.f32.gmra.mxu1 %vm686_vm1, %v656_v17 }
  0xfc   : > { %v657_v22 = vmax.f32 %v555_v20, 0.0  ;;  %v570_v24 = vadd.f32 %v1570_v21, %v1942_v38 }
  0xfd   : > { %v564_v25 = vpop.f32.mrf.mxu0 }
  0xfe   : > { %v565_v26 = vadd.f32 %v1942_v38, %v564_v25  ;;  %1621 = vmatprep.mubr.msk.f32.mxu1 %vm686_vm1, %v657_v22  ;;  %v660_v29 = vmax.f32 %v570_v24, 0.0 }
  0xff   : > { %v1573_v27 = vpop.f32.mrf.mxu0  ;;  %1622 = vmatmul.mubr.msk.f32.gmra.mxu1 %vm686_vm1, %v658_v23 }
 0x100   : > { %v659_v28 = vmax.f32 %v565_v26, 0.0  ;;  %v580_v30 = vadd.f32 %v1573_v27, %v1942_v38 }
 0x101   : > { %v574_v31 = vpop.f32.mrf.mxu0 }
 0x102   : > { %v575_v32 = vadd.f32 %v1942_v38, %v574_v31  ;;  %1624 = vmatprep.mubr.msk.f32.mxu1 %vm686_vm1, %v659_v28  ;;  %v662_v35 = vmax.f32 %v580_v30, 0.0 }
 0x103   : > { %v1576_v33 = vpop.f32.mrf.mxu0  ;;  %1625 = vmatmul.mubr.msk.f32.gmra.mxu1 %vm686_vm1, %v660_v29 }
 0x104   : > { %v661_v34 = vmax.f32 %v575_v32, 0.0  ;;  %v590_v36 = vadd.f32 %v1576_v33, %v1942_v38 }
 0x105   : > { %v584_v37 = vpop.f32.mrf.mxu0 }
 0x106   : > { %v585_v39 = vadd.f32 %v1942_v38, %v584_v37  ;;  %1627 = vmatprep.mubr.msk.f32.mxu1 %vm686_vm1, %v661_v34  ;;  %v664_v42 = vmax.f32 %v590_v36, 0.0 }
 0x107   : > { %v1579_v40 = vpop.f32.mrf.mxu0  ;;  %1628 = vmatmul.mubr.msk.f32.gmra.mxu1 %vm686_vm1, %v662_v35 }
 0x108   : > { %v663_v41 = vmax.f32 %v585_v39, 0.0  ;;  %v600_v43 = vadd.f32 %v1579_v40, %v1942_v38  ;;  %v2048_v39 = vld [vmem:[%s2169_s4] ss:$0 sm:$0xff] }
 0x109   : > { %v594_v44 = vpop.f32.mrf.mxu0 }
 0x10a   : > { %v595_v45 = vadd.f32 %v1942_v38, %v594_v44  ;;  %1630 = vmatprep.mubr.msk.f32.mxu1 %vm686_vm1, %v663_v41  ;;  %v666_v48 = vmax.f32 %v600_v43, 0.0 }
 0x10b   : > { %v1582_v46 = vpop.f32.mrf.mxu0  ;;  %1631 = vmatmul.mubr.msk.f32.gmra.mxu1 %vm686_vm1, %v664_v42 }
 0x10c   : > { %v665_v47 = vmax.f32 %v595_v45, 0.0  ;;  %v610_v49 = vadd.f32 %v1582_v46, %v1942_v38 }
 0x10d   : > { %v604_v50 = vpop.f32.mrf.mxu0 }
 0x10e   : > { %v605_v51 = vadd.f32 %v1942_v38, %v604_v50  ;;  %1633 = vmatprep.mubr.msk.f32.mxu1 %vm686_vm1, %v665_v47  ;;  %v668_v54 = vmax.f32 %v610_v49, 0.0 }
 0x10f   : > { %v1585_v52 = vpop.f32.mrf.mxu0  ;;  %1634 = vmatmul.mubr.msk.f32.gmra.mxu1 %vm686_vm1, %v666_v48 }
 0x110   : > { %v667_v53 = vmax.f32 %v605_v51, 0.0  ;;  %v620_v55 = vadd.f32 %v1585_v52, %v1942_v38 }
 0x111   : > { %v614_v56 = vpop.f32.mrf.mxu0 }
 0x112   : > { %v615_v57 = vadd.f32 %v1942_v38, %v614_v56  ;;  %1636 = vmatprep.mubr.msk.f32.mxu1 %vm686_vm1, %v667_v53  ;;  %v670_v60 = vmax.f32 %v620_v55, 0.0 }
 0x113   : > { %v1588_v58 = vpop.f32.mrf.mxu0  ;;  %1637 = vmatmul.mubr.msk.f32.gmra.mxu1 %vm686_vm1, %v668_v54 }
 0x114   : > { %v669_v59 = vmax.f32 %v615_v57, 0.0  ;;  %v630_v61 = vadd.f32 %v1588_v58, %v1942_v38 }
 0x115   : > { %v624_v62 = vpop.f32.mrf.mxu0 }
 0x116   : > { %v625_v63 = vadd.f32 %v1942_v38, %v624_v62  ;;  %1639 = vmatprep.mubr.msk.f32.mxu1 %vm686_vm1, %v669_v59  ;;  %v672_v2 = vmax.f32 %v630_v61, 0.0 }
 0x117   : > { %v1591_v0 = vpop.f32.mrf.mxu0  ;;  %1640 = vmatmul.mubr.msk.f32.gmra.mxu1 %vm686_vm1, %v670_v60 }
 0x118   : > { %v671_v1 = vmax.f32 %v625_v63, 0.0  ;;  %v640_v3 = vadd.f32 %v1591_v0, %v1942_v38 }
 0x119   : > { %v634_v4 = vpop.f32.mrf.mxu0 }
 0x11a   : > { %v635_v5 = vadd.f32 %v1942_v38, %v634_v4  ;;  %1642 = vmatprep.mubr.msk.f32.mxu1 %vm686_vm1, %v671_v1  ;;  %v674_v7 = vmax.f32 %v640_v3, 0.0 }
 0x11b   : > { %1643 = vmatmul.mubr.msk.f32.gmra.mxu1 %vm686_vm1, %v672_v2 }
 0x11c   : > { %v673_v6 = vmax.f32 %v635_v5, 0.0 }
 0x11e   : > { %1645 = vmatprep.mubr.msk.f32.mxu1 %vm686_vm1, %v673_v6 }
 0x11f   : > { %1646 = vmatmul.mubr.msk.f32.gmra.mxu1 %vm686_vm1, %v674_v7 }
 0x1a3   : > { %v2015_v9 = vpop.f32.mrf.mxu1 }
 0x1a5   : > { %v2017_v38 = vpop.f32.mrf.mxu1 }
 0x1a7   : > { %v2019_v10 = vpop.f32.mrf.mxu1 }
 0x1a9   : > { %v2021_v11 = vpop.f32.mrf.mxu1 }
 0x1ab   : > { %v2023_v12 = vpop.f32.mrf.mxu1 }
 0x1ad   : > { %v2025_v13 = vpop.f32.mrf.mxu1 }
 0x1af   : > { %v2027_v14 = vpop.f32.mrf.mxu1 }
 0x1b1   : > { %v2029_v15 = vpop.f32.mrf.mxu1 }
 0x1b3   : > { %v1614_v16 = vpop.f32.mrf.mxu1 }
 0x1b4   : > { %v895_v2 = vadd.f32 %v1614_v16, %v2048_v39  ;;  %v885_v16 = vadd.f32 %v2027_v14, %v2048_v39  ;;  %v875_v14 = vadd.f32 %v2023_v12, %v2048_v39  ;;  %v865_v12 = vadd.f32 %v2019_v10, %v2048_v39 }
 0x1b5   : > { %v2031_v17 = vpop.f32.mrf.mxu1  ;;  %v855_v10 = vadd.f32 %v2015_v9, %v2048_v39  ;;  %v1042_v9 = vstv %s1041_s23 }
 0x1b6   : > { %v1017_v6 = vmax.f32 %v895_v2, 0.0  ;;  %v890_v7 = vadd.f32 %v2048_v39, %v2031_v17  ;;  %v880_v17 = vadd.f32 %v2048_v39, %v2029_v15  ;;  %v1013_v15 = vmax.f32 %v875_v14, 0.0 }
 0x1b7   : > { %v1617_v18 = vpop.f32.mrf.mxu1 }
 0x1b8   : > { %v905_v58 = vadd.f32 %v1617_v18, %v2048_v39 }
 0x1b9   : > { %v899_v19 = vpop.f32.mrf.mxu1 }
 0x1ba   : > { %v1019_v62 = vmax.f32 %v905_v58, 0.0  ;;  %v900_v63 = vadd.f32 %v2048_v39, %v899_v19 }
 0x1bb   : > { %v1620_v20 = vpop.f32.mrf.mxu1 }
 0x1bc   : > { %v915_v50 = vadd.f32 %v1620_v20, %v2048_v39  ;;  %v1018_v3 = vmax.f32 %v900_v63, 0.0  ;;  %v1016_v20 = vmax.f32 %v890_v7, 0.0 }
 0x1bd   : > { %v909_v21 = vpop.f32.mrf.mxu1 }
 0x1be   : > { %v1021_v54 = vmax.f32 %v915_v50, 0.0  ;;  %v910_v55 = vadd.f32 %v2048_v39, %v909_v21 }
 0x1bf   : > { %v1623_v22 = vpop.f32.mrf.mxu1 }
 0x1c0   : > { %v925_v40 = vadd.f32 %v1623_v22, %v2048_v39  ;;  %v1020_v59 = vmax.f32 %v910_v55, 0.0  ;;  %v1231_v55 = vlaneseq }
 0x1c1   : > { %v919_v23 = vpop.f32.mrf.mxu1 }
 0x1c2   : > { %v1023_v46 = vmax.f32 %v925_v40, 0.0  ;;  %v920_v47 = vadd.f32 %v2048_v39, %v919_v23  ;;  %v1015_v23 = vmax.f32 %v885_v16, 0.0  ;;  %vm1245_vm2 = vcmp.lt.s32.totalorder %v1231_v55, 256 }
 0x1c3   : > { %v2033_v24 = vpop.f32.mrf.mxu1 }
 0x1c4   : > { %v1022_v51 = vmax.f32 %v920_v47, 0.0 }
 0x1c5   : > { %v2035_v25 = vpop.f32.mrf.mxu1 }
 0x1c7   : > { %v2037_v26 = vpop.f32.mrf.mxu1 }
 0x1c9   : > { %v2039_v27 = vpop.f32.mrf.mxu1 }
 0x1ca   : > { %v940_v40 = vadd.f32 %v2048_v39, %v2039_v27 }
 0x1cb   : > { %v2041_v28 = vpop.f32.mrf.mxu1 }
 0x1cd   : > { %v2043_v29 = vpop.f32.mrf.mxu1 }
 0x1cf   : > { %v1635_v30 = vpop.f32.mrf.mxu1 }
 0x1d0   : > { %v965_v18 = vadd.f32 %v1635_v30, %v2048_v39  ;;  %v955_v30 = vadd.f32 %v2041_v28, %v2048_v39  ;;  %v870_v28 = vadd.f32 %v2048_v39, %v2025_v13  ;;  %v1011_v13 = vmax.f32 %v865_v12, 0.0 }
 0x1d1   : > { %v959_v31 = vpop.f32.mrf.mxu1 }
 0x1d2   : > { %v1031_v21 = vmax.f32 %v965_v18, 0.0  ;;  %v960_v22 = vadd.f32 %v2048_v39, %v959_v31  ;;  %v1014_v31 = vmax.f32 %v880_v17, 0.0 }
 0x1d3   : > { %v1638_v32 = vpop.f32.mrf.mxu1 }
 0x1d4   : > { %v975_v0 = vadd.f32 %v1638_v32, %v2048_v39  ;;  %v1030_v32 = vmax.f32 %v960_v22, 0.0 }
 0x1d5   : > { %v969_v33 = vpop.f32.mrf.mxu1 }
 0x1d6   : > { %v1033_v4 = vmax.f32 %v975_v0, 0.0  ;;  %v970_v5 = vadd.f32 %v2048_v39, %v969_v33  ;;  %v1029_v33 = vmax.f32 %v955_v30, 0.0 }
 0x1d7   : > { %v1641_v34 = vpop.f32.mrf.mxu1 }
 0x1d8   : > { %v985_v56 = vadd.f32 %v1641_v34, %v2048_v39  ;;  %v1032_v19 = vmax.f32 %v970_v5, 0.0  ;;  %v950_v34 = vadd.f32 %v2048_v39, %v2043_v29  ;;  %v1012_v29 = vmax.f32 %v870_v28, 0.0 }
 0x1d9   : > { %v979_v35 = vpop.f32.mrf.mxu1 }
 0x1da   : > { %v1035_v60 = vmax.f32 %v985_v56, 0.0  ;;  %v980_v61 = vadd.f32 %v2048_v39, %v979_v35  ;;  %v945_v35 = vadd.f32 %v2037_v26, %v2048_v39  ;;  %v860_v26 = vadd.f32 %v2048_v39, %v2021_v11 }
 0x1db   : > { %v1644_v36 = vpop.f32.mrf.mxu1  ;;  %v1009_v11 = vmax.f32 %v855_v10, 0.0 }
 0x1dc   : > { %v995_v48 = vadd.f32 %v1644_v36, %v2048_v39  ;;  %v1034_v1 = vmax.f32 %v980_v61, 0.0  ;;  %v1028_v36 = vmax.f32 %v950_v34, 0.0  ;;  %v1010_v27 = vmax.f32 %v860_v26, 0.0 }
 0x1dd   : > { %v989_v37 = vpop.f32.mrf.mxu1 }
 0x1de   : > { %v1037_v52 = vmax.f32 %v995_v48, 0.0  ;;  %v990_v53 = vadd.f32 %v2048_v39, %v989_v37  ;;  %v1027_v37 = vmax.f32 %v945_v35, 0.0 }
 0x1df   : > { %v1647_v41 = vpop.f32.mrf.mxu1 }
 0x1e0   : > { %v1005_v42 = vadd.f32 %v1647_v41, %v2048_v39  ;;  %v1036_v57 = vmax.f32 %v990_v53, 0.0  ;;  %v935_v41 = vadd.f32 %v2033_v24, %v2048_v39  ;;  %v850_v24 = vadd.f32 %v2048_v39, %v2017_v38 }
 0x1e1   : > { %v999_v43 = vpop.f32.mrf.mxu1 }
 0x1e2   : > { %v1039_v44 = vmax.f32 %v1005_v42, 0.0  ;;  %v1000_v45 = vadd.f32 %v2048_v39, %v999_v43  ;;  %v1026_v42 = vmax.f32 %v940_v40, 0.0  ;;  %v1025_v43 = vmax.f32 %v935_v41, 0.0 }
 0x1e4   : > { %v1038_v49 = vmax.f32 %v1000_v45, 0.0  ;;  %1506 = vmatprep.subr.msk.mxu0 %vm686_vm1, %v1039_v44  ;;  %v930_v44 = vadd.f32 %v2048_v39, %v2035_v25 }
 0x1e5   : > { %1507 = vmatpush3.xpose.msk.msra.mxu0 %vm686_vm1, %v1023_v46  ;;  %v1008_v46 = vmax.f32 %v850_v24, 0.0 }
 0x1e6   : > { %1508 = vmatprep.subr.msk.mxu0 %vm686_vm1, %v1038_v49  ;;  %v1024_v45 = vmax.f32 %v930_v44, 0.0 }
 0x1e9   : > { %1509 = vmatpush3.xpose.msk.msra.mxu0 %vm686_vm1, %v1022_v51 }
 0x1ea   : > { %1510 = vmatprep.subr.msk.mxu0 %vm686_vm1, %v1037_v52 }
 0x1ed   : > { %1511 = vmatpush3.xpose.msk.msra.mxu0 %vm686_vm1, %v1021_v54  ;;  %v1758_v54 = vmov 1966171168  }
 0x1ee   : > { %1512 = vmatprep.subr.msk.mxu0 %vm686_vm1, %v1036_v57  ;;  %v1232_v57 = vshrl.u32 %v1231_v55, 7 }
 0x1f1   : > { %1513 = vmatpush3.xpose.msk.msra.mxu0 %vm686_vm1, %v1020_v59 }
 0x1f2   : > { %1514 = vmatprep.subr.msk.mxu0 %vm686_vm1, %v1035_v60 }
 0x1f5   : > { %1515 = vmatpush3.xpose.msk.msra.mxu0 %vm686_vm1, %v1019_v62 }
 0x1f6   : > { %1516 = vmatprep.subr.msk.mxu0 %vm686_vm1, %v1034_v1 }
 0x1f9   : > { %1517 = vmatpush3.xpose.msk.msra.mxu0 %vm686_vm1, %v1018_v3 }
 0x1fa   : > { %1518 = vmatprep.subr.msk.mxu0 %vm686_vm1, %v1033_v4 }
 0x1fd   : > { %1519 = vmatpush3.xpose.msk.msra.mxu0 %vm686_vm1, %v1017_v6 }
 0x1fe   : > { %1520 = vmatprep.subr.msk.mxu0 %vm686_vm1, %v1032_v19 }
 0x201   : > { %1521 = vmatpush3.xpose.msk.msra.mxu0 %vm686_vm1, %v1016_v20 }
 0x202   : > { %1522 = vmatprep.subr.msk.mxu0 %vm686_vm1, %v1031_v21 }
 0x205   : > { %1523 = vmatpush3.xpose.msk.msra.mxu0 %vm686_vm1, %v1015_v23 }
 0x206   : > { %1524 = vmatprep.subr.msk.mxu0 %vm686_vm1, %v1030_v32 }
 0x209   : > { %1525 = vmatpush3.xpose.msk.msra.mxu0 %vm686_vm1, %v1014_v31 }
 0x20a   : > { %1526 = vmatprep.subr.msk.mxu0 %vm686_vm1, %v1029_v33 }
 0x20d   : > { %1527 = vmatpush3.xpose.msk.msra.mxu0 %vm686_vm1, %v1013_v15 }
 0x20e   : > { %1528 = vmatprep.subr.msk.mxu0 %vm686_vm1, %v1028_v36 }
 0x211   : > { %1529 = vmatpush3.xpose.msk.msra.mxu0 %vm686_vm1, %v1012_v29 }
 0x212   : > { %1530 = vmatprep.subr.msk.mxu0 %vm686_vm1, %v1027_v37 }
 0x215   : > { %1531 = vmatpush3.xpose.msk.msra.mxu0 %vm686_vm1, %v1011_v13 }
 0x216   : > { %1532 = vmatprep.subr.msk.mxu0 %vm686_vm1, %v1026_v42 }
 0x219   : > { %1533 = vmatpush3.xpose.msk.msra.mxu0 %vm686_vm1, %v1010_v27 }
 0x21a   : > { %1534 = vmatprep.subr.msk.mxu0 %vm686_vm1, %v1025_v43 }
 0x21d   : > { %1535 = vmatpush3.xpose.msk.msra.mxu0 %vm686_vm1, %v1009_v11 }
 0x21e   : > { %1536 = vmatprep.subr.msk.mxu0 %vm686_vm1, %v1024_v45 }
 0x221   : > { %1537 = vmatpush3.xpose.msk.msra.mxu0 %vm686_vm1, %v1008_v46 }
 0x224   : > { %1539 = vmatmul.mubr.msk.f32.vlgmr.msra.gmra.mxu0 %vm686_vm1, %v2011_v8  ;;  %v1229_v8 = vunpack.c.l.s4 %v1758_v54 }
 0x226   : > { %v1230_v56 = vunpack.c.0.s8 %v1229_v8 }
 0x228   : > { %v1233_v59 = vsub.s32 %v1230_v56, %v1232_v57 }
 0x2e4   : > { %v1208_v25 = vpop.f32.mrf.mxu0 }
 0x2e5   : > { %v1209_v47 = vadd.f32 %v1208_v25, %v1042_v9 }
 0x2e6   : > { %v1210_v48 = vpop.f32.mrf.mxu0 }
 0x2e7   : > { %v1428_v49 = vmul.f32 -1.442695, %v1209_v47  ;;  %v1211_v50 = vadd.f32 %v1210_v48, %v1042_v9 }
 0x2e9   : > { %1688 = vpow2.f32 %v1428_v49  ;;  %v1429_v38 = vmul.f32 -1.442695, %v1211_v50 }
 0x2eb   : > { %1690 = vpow2.f32 %v1429_v38 }
 0x2f6   : > { %v1689_v39 = vpop.eup %1688 }
 0x2f7   : > { %v1219_v51 = vadd.f32 1.0, %v1689_v39 }
 0x2f8   : > { %v1691_v52 = vpop.eup %1690 }
 0x2f9   : > { %v1220_v53 = vadd.f32 1.0, %v1691_v52  ;;  %1692 = vrcp.f32 %v1219_v51 }
 0x2fb   : > { %1694 = vrcp.f32 %v1220_v53 }
 0x306   : > { %v1693_v58 = vpop.eup %1692 }
 0x308   : > { %v1695_v60 = vpop.eup %1694 }
 0x309   : > { %v1227_v61 = vcombine.low %v1693_v58, %v1695_v60 }
 0x30b   : > { %v1234_v62 = vrot.slane %v1227_v61, %v1233_v59 }
 0x30d   : > { %v1241_v63 = vrot.slane %v1234_v62, %v1233_v59 }
 0x30f   : > { %1247 = vst.msk [vmem:[%s273_s6] sm:$0x3] %vm1245_vm2, %v1241_v63 }
 0x310   : > { %1709 = shalt.err (!%p1706_p3)
}
 0x311   : > { %s1710_s21 = scalar_lea.hbm %s1261_s14, 32  ;;  %s1714_s23 = scalar_lea.hbm %s2172_s7, 64 }
 0x312   : > { %p1711_p4 = scmp.ne.s32.totalorder %s1261_s14, %s1710_s21  ;;  %p1715_p9 = scmp.lt.s32.totalorder %s1261_s14, %s2172_s7 }
 0x313   : > { %p1716_p10 = scmp.lt.s32.totalorder %s1714_s23, %s1710_s21 }
 0x314   : > { %p1712_p7 = pnand %p1711_p4, %p1838_p5 }
 0x315   : > { %p1717_p11 = por %p1716_p10, %p1715_p9 }
 0x316   : > { %p1713_p8 = pneg %p1712_p7 }
 0x318   : > { %p1718_p12 = pnand %p1717_p11, %p1713_p8 }
 0x31a   : > { %1721 = shalt.err (!%p1718_p12)
}
 0x31b   : > { %1648 = dma.vmem_to_hbm [thread:$0]  (%p1838_p5), %s1264_s30, 32, %s1261_s14, %s1249_s15  }
 0x31c PF: > { %p1654_p13 = scmp.ge.s32.totalorder %s1756_s29, 2  ;;  %s1275_s6 = sand.u32 1, %s1744_s26  }
 0x31d   : > { %s1276_s9 = scalar_lea.sflag [#allocation4], %s1275_s6 }
 0x31e   : > { %p1651_p0 = pnand %p1654_p13, %p1842_p6 }
 0x320   : > { %p1652_p1 = pneg %p1651_p0 }
 0x322   : > { %1739 = dma.done.wait (%p1652_p1), %s1276_s9, 32  }
 0x323   : > { %1741 = vsyncadd (%p1652_p1), %s1276_s9, 4294967264  ;;  %p18_p2 = scmp.ge.s32.totalorder %s1826_s8, 4   ;;  %s2175_s26 = smov %s1748_s27 }
 0x324   : > { %s2176_s27 = smov %s1752_s28  ;;  %s2177_s28 = smov %s1836_s11 }
 0x325   : > { %s2178_s29 = smov %s1826_s8  ;;  %20 = sbr.rel (!%p18_p2) target bundleno = 5 (0x5), region = 83 }
 0x32a   :  { %1281 = vsyncpa [#allocation4], 1 }
 0x32b   :  { %1283 = vsyncpa [#allocation4 + $0x1], 1 }

</bundles_post_ra>
